<compile_context>
chip_gen: v7x
topology: tpu7x:2x2x1
jax: 0.10.0
libtpu: 0.0.40
codegen_flags: <defaults>
</compile_context>

<pallas_src>
import numpy as np
import jax
import jax.numpy as jnp
from jax.experimental import pallas as pl
from jax.experimental.pallas import tpu as pltpu


# --------------------------------------------------------------------------- #
# Kernel
# --------------------------------------------------------------------------- #
def se_resblock_kernel(x_ref, t1_ref, b1_ref, t2_ref, b2_ref,
                       fc1_ref, fc2_ref, pool_ref, spread_ref,
                       out_ref, rows_ref):
    # x_ref     : (H, L)  f32, L = B*W*C lane-dense (lane = b*W*C + w*C + c)
    # t1/t2_ref : (3, L, L) bf16/f32 block-diagonal row-Toeplitz conv weights
    # b1/b2_ref : (1, L)  f32 lane-dense biases
    # fc1_ref   : (B*C, B*Cr) f32 block-diag SE fc1 ; fc2_ref: (B*Cr, B*C)
    # pool_ref  : (L, B*C) f32 channel-mean selector (1/(H*W) folded in)
    # spread_ref: (B*C, L) f32 gate-spread selector
    # out_ref   : (H, L)  f32
    # rows_ref  : (HP_pad, L) f32 scratch: row 0 = top halo, rows 1..H = image,
    #             row H+1 = bottom halo, remaining rows unused padding.
    H, L = x_ref.shape
    mxu_dtype = t1_ref.dtype

    x = x_ref[...]                                      # reused: conv in, SE pool, residual

    # ---- stage the conv input; zero ONLY the two halo rows -----------------
    # (grid has a single step, so the halo stays zero across both convs; if
    #  this kernel is ever tiled over a grid, re-zero these rows per step.)
    zrow = jnp.zeros((1, L), rows_ref.dtype)
    rows_ref[0:1, :] = zrow
    rows_ref[H + 1:H + 2, :] = zrow
    rows_ref[1:H + 1, :] = x

    # ---- conv1 (3x3, SAME) = 3 block-Toeplitz matmuls, one accumulate chain
    # Taps are pure sublane shifts of the same staged buffer; W-direction
    # padding is encoded inside t1, H-direction padding by the zero halo rows.
    acc = jnp.dot(rows_ref[0:H, :].astype(mxu_dtype), t1_ref[0],
                  preferred_element_type=jnp.float32)
    acc += jnp.dot(rows_ref[1:H + 1, :].astype(mxu_dtype), t1_ref[1],
                   preferred_element_type=jnp.float32)
    acc += jnp.dot(rows_ref[2:H + 2, :].astype(mxu_dtype), t1_ref[2],
                   preferred_element_type=jnp.float32)
    y1 = jnp.maximum(acc + b1_ref[...], 0.0)            # (H, L) f32

    # ---- restage relu(conv1); halo rows untouched (still zero) -------------
    rows_ref[1:H + 1, :] = y1

    # ---- conv2 (3x3, SAME) + bias ------------------------------------------
    acc = jnp.dot(rows_ref[0:H, :].astype(mxu_dtype), t2_ref[0],
                  preferred_element_type=jnp.float32)
    acc += jnp.dot(rows_ref[1:H + 1, :].astype(mxu_dtype), t2_ref[1],
                   preferred_element_type=jnp.float32)
    acc += jnp.dot(rows_ref[2:H + 2, :].astype(mxu_dtype), t2_ref[2],
                   preferred_element_type=jnp.float32)
    y2 = acc + b2_ref[...]                               # (H, L) f32

    # ---- SE gate, fully batched (pooled over the ORIGINAL input x, as the
    #      PyTorch module does) -- no per-batch loop, all batches at once ----
    hsum = jnp.sum(x, axis=0, keepdims=True)                               # (1, L)
    pooled = jnp.dot(hsum, pool_ref[...],
                     preferred_element_type=jnp.float32)                   # (1, B*C) = mean
    hid = jnp.maximum(jnp.dot(pooled, fc1_ref[...],
                              preferred_element_type=jnp.float32), 0.0)    # (1, B*Cr)
    gate = jax.nn.sigmoid(jnp.dot(hid, fc2_ref[...],
                                  preferred_element_type=jnp.float32))     # (1, B*C)
    gate_ld = jnp.dot(gate, spread_ref[...],
                      preferred_element_type=jnp.float32)                  # (1, L)

    # ---- residual add -------------------------------------------------------
    out_ref[...] = (x + y2 * gate_ld).astype(out_ref.dtype)


# --------------------------------------------------------------------------- #
# One-time (per weight set) host-side packing -- hoisted out of the call path
# --------------------------------------------------------------------------- #
def build_se_resblock_params(w1_hwio, b1, w2_hwio, b2, fc1, fc2, *,
                             batch, height, width, conv_dtype=jnp.bfloat16):
    """Packs conv/fc weights for the fused kernel.  Pure numpy; call ONCE per
    weight set and reuse the returned tuple for every forward call."""
    KH, KW, C, _ = w1_hwio.shape
    B, H, W = batch, height, width
    Cr = fc1.shape[1]
    WC = W * C
    L = B * WC
    BC, BCr = B * C, B * Cr

    def toeplitz(w_hwio):
        w_np = np.asarray(w_hwio, np.float32)
        blk = np.zeros((KH, WC, WC), np.float32)
        for kw in range(KW):
            for w in range(W):
                wi = w + kw - 1            # input column feeding output col w via tap kw
                if 0 <= wi < W:
                    blk[:, wi * C:(wi + 1) * C, w * C:(w + 1) * C] = w_np[:, kw]
        t = np.zeros((KH, L, L), np.float32)
        for b in range(B):                 # block-diagonal over batch-on-lanes
            t[:, b * WC:(b + 1) * WC, b * WC:(b + 1) * WC] = blk
        return jnp.asarray(t, conv_dtype)

    def bias_lane(bv):
        bv = np.asarray(bv, np.float32).reshape(1, 1, 1, C)
        return jnp.asarray(np.tile(bv, (1, B, W, 1)).reshape(1, L), jnp.float32)

    t1 = toeplitz(w1_hwio)
    t2 = toeplitz(w2_hwio)
    b1_ld = bias_lane(b1)
    b2_ld = bias_lane(b2)

    # channel-mean selector (1/(H*W) folded in) and gate-spread selector
    pool = np.zeros((L, BC), np.float32)
    spread = np.zeros((BC, L), np.float32)
    inv_hw = 1.0 / (H * W)
    for b in range(B):
        for w in range(W):
            for c in range(C):
                pool[b * WC + w * C + c, b * C + c] = inv_hw
                spread[b * C + c, b * WC + w * C + c] = 1.0

    # block-diagonal SE fc weights (so the whole batch runs as one matmul)
    fc1_np = np.asarray(fc1, np.float32)
    fc2_np = np.asarray(fc2, np.float32)
    fc1_blk = np.zeros((BC, BCr), np.float32)
    fc2_blk = np.zeros((BCr, BC), np.float32)
    for b in range(B):
        fc1_blk[b * C:(b + 1) * C, b * Cr:(b + 1) * Cr] = fc1_np
        fc2_blk[b * Cr:(b + 1) * Cr, b * C:(b + 1) * C] = fc2_np

    return (t1, b1_ld, t2, b2_ld,
            jnp.asarray(fc1_blk), jnp.asarray(fc2_blk),
            jnp.asarray(pool), jnp.asarray(spread))


# --------------------------------------------------------------------------- #
# Jittable apply
# --------------------------------------------------------------------------- #
def se_resblock_apply(x_nchw, t1, b1_ld, t2, b2_ld, fc1_blk, fc2_blk, pool, spread):
    """x_nchw: (B, C, H, W) f32 -> (B, C, H, W) f32."""
    B, C, H, W = x_nchw.shape
    L = t1.shape[1]
    BC = pool.shape[1]
    assert L == B * W * C and BC == B * C
    HP_pad = ((H + 2 + 7) // 8) * 8          # sublane-aligned padded scratch rows

    # Lane-dense, batch-on-lanes layout: rows = H, lanes = (b, w, c) -> B*W*C.
    # TODO(synk): accept NHWC / lane-dense input directly to drop this transpose.
    x_rows = jnp.transpose(x_nchw, (2, 0, 3, 1)).reshape(H, L)

    out_rows = pl.pallas_call(
        se_resblock_kernel,
        out_shape=jax.ShapeDtypeStruct((H, L), jnp.float32),
        grid_spec=pltpu.PrefetchScalarGridSpec(
            num_scalar_prefetch=0,
            grid=(1,),   # batch already packed on lanes at this size; for big
                         # H/B tile over H-bands with "parallel" semantics.
            in_specs=[
                pl.BlockSpec((H, L), lambda i: (0, 0)),          # x
                pl.BlockSpec((3, L, L), lambda i: (0, 0, 0)),    # t1
                pl.BlockSpec((1, L), lambda i: (0, 0)),          # b1
                pl.BlockSpec((3, L, L), lambda i: (0, 0, 0)),    # t2
                pl.BlockSpec((1, L), lambda i: (0, 0)),          # b2
                pl.BlockSpec(fc1_blk.shape, lambda i: (0, 0)),   # fc1 block-diag
                pl.BlockSpec(fc2_blk.shape, lambda i: (0, 0)),   # fc2 block-diag
                pl.BlockSpec(pool.shape, lambda i: (0, 0)),      # pool selector
                pl.BlockSpec(spread.shape, lambda i: (0, 0)),    # spread selector
            ],
            out_specs=pl.BlockSpec((H, L), lambda i: (0, 0)),
            scratch_shapes=[pltpu.VMEM((HP_pad, L), jnp.float32)],
        ),
        compiler_params=pltpu.CompilerParams(
            dimension_semantics=("arbitrary",),
            vmem_limit_bytes=32 * 1024 * 1024,
        ),
    )(x_rows, t1, b1_ld, t2, b2_ld, fc1_blk, fc2_blk, pool, spread)

    return jnp.transpose(out_rows.reshape(H, B, W, C), (1, 3, 0, 2))


# --------------------------------------------------------------------------- #
# Pure-JAX reference matching the PyTorch module semantics
# --------------------------------------------------------------------------- #
def ref_forward(x_nchw, w1, b1, w2, b2, fc1, fc2):
    x = jnp.transpose(x_nchw, (0, 2, 3, 1))
    dn = jax.lax.conv_dimension_numbers(x.shape, w1.shape, ('NHWC', 'HWIO', 'NHWC'))
    y1 = jax.lax.conv_general_dilated(x, w1, (1, 1), 'SAME', dimension_numbers=dn) + b1
    y1 = jnp.maximum(y1, 0.0)
    y2 = jax.lax.conv_general_dilated(y1, w2, (1, 1), 'SAME', dimension_numbers=dn) + b2
    pooled = jnp.mean(x, axis=(1, 2))                            # (B, C) -- pooled on INPUT
    gate = jax.nn.sigmoid(jnp.maximum(pooled @ fc1, 0.0) @ fc2)  # (B, C)
    out = x + y2 * gate[:, None, None, :]
    return jnp.transpose(out, (0, 3, 1, 2))


# --------------------------------------------------------------------------- #
if __name__ == "__main__":
    B, C, H, W = 2, 4, 16, 16
    reduction = 2
    Cr = C // reduction

    key = jax.random.PRNGKey(0)
    k = jax.random.split(key, 7)
    x = jax.random.normal(k[0], (B, C, H, W), jnp.float32)
    w1 = jax.random.normal(k[1], (3, 3, C, C), jnp.float32) * 0.2   # HWIO
    b1 = jax.random.normal(k[2], (C,), jnp.float32) * 0.1
    w2 = jax.random.normal(k[3], (3, 3, C, C), jnp.float32) * 0.2
    b2 = jax.random.normal(k[4], (C,), jnp.float32) * 0.1
    fc1 = jax.random.normal(k[5], (C, Cr), jnp.float32) * 0.3       # (in, out), no bias
    fc2 = jax.random.normal(k[6], (Cr, C), jnp.float32) * 0.3

    ref = ref_forward(x, w1, b1, w2, b2, fc1, fc2)
    fwd = jax.jit(se_resblock_apply)

    # Exactness check of the fused algorithm with f32 MXU inputs.
    params_f32 = build_se_resblock_params(w1, b1, w2, b2, fc1, fc2,
                                          batch=B, height=H, width=W,
                                          conv_dtype=jnp.float32)
    out_f32 = jax.block_until_ready(fwd(x, *params_f32))
    assert out_f32.shape == (B, C, H, W)
    assert jnp.allclose(out_f32, ref, atol=1e-4, rtol=1e-4), "f32 mismatch vs reference"

    # Default performance configuration: bf16 MXU operands (tolerance reflects
    # two chained 3x3 convs computed with bf16 inputs, f32 accumulation).
    params_bf16 = build_se_resblock_params(w1, b1, w2, b2, fc1, fc2,
                                           batch=B, height=H, width=W,
                                           conv_dtype=jnp.bfloat16)
    out_bf16 = jax.block_until_ready(fwd(x, *params_bf16))
    assert out_bf16.shape == (B, C, H, W)
    assert jnp.allclose(out_bf16, ref, atol=7.5e-2, rtol=7.5e-2), "bf16 mismatch vs reference"

    print("KERNEL_OK")
</pallas_src>

<mosaic_0001>
module attributes {stable_mosaic.version = 11 : i64} {
  func.func @se_resblock_kernel(%arg0: i32, %arg1: memref<16x128xf32, #tpu.memory_space<vmem>>, %arg2: memref<3x128x128xf32, #tpu.memory_space<vmem>>, %arg3: memref<1x128xf32, #tpu.memory_space<vmem>>, %arg4: memref<3x128x128xf32, #tpu.memory_space<vmem>>, %arg5: memref<1x128xf32, #tpu.memory_space<vmem>>, %arg6: memref<8x4xf32, #tpu.memory_space<vmem>>, %arg7: memref<4x8xf32, #tpu.memory_space<vmem>>, %arg8: memref<128x8xf32, #tpu.memory_space<vmem>>, %arg9: memref<8x128xf32, #tpu.memory_space<vmem>>, %arg10: memref<16x128xf32, #tpu.memory_space<vmem>>, %arg11: memref<24x128xf32, #tpu.memory_space<vmem>>) attributes {dimension_semantics = [#tpu.dimension_semantics<arbitrary>], iteration_bounds = array<i64: 1>, scalar_prefetch = 0 : i64, scratch_operands = 1 : i64, tpu.core_type = #tpu.core_type<tc>, window_params = [{pipeline_mode = #tpu.pipeline_mode<synchronous>, transform_indices = @transform_0, window_bounds = array<i64: 16, 128>}, {pipeline_mode = #tpu.pipeline_mode<synchronous>, transform_indices = @transform_1, window_bounds = array<i64: 3, 128, 128>}, {pipeline_mode = #tpu.pipeline_mode<synchronous>, transform_indices = @transform_2, window_bounds = array<i64: 1, 128>}, {pipeline_mode = #tpu.pipeline_mode<synchronous>, transform_indices = @transform_3, window_bounds = array<i64: 3, 128, 128>}, {pipeline_mode = #tpu.pipeline_mode<synchronous>, transform_indices = @transform_4, window_bounds = array<i64: 1, 128>}, {pipeline_mode = #tpu.pipeline_mode<synchronous>, transform_indices = @transform_5, window_bounds = array<i64: 8, 4>}, {pipeline_mode = #tpu.pipeline_mode<synchronous>, transform_indices = @transform_6, window_bounds = array<i64: 4, 8>}, {pipeline_mode = #tpu.pipeline_mode<synchronous>, transform_indices = @transform_7, window_bounds = array<i64: 128, 8>}, {pipeline_mode = #tpu.pipeline_mode<synchronous>, transform_indices = @transform_8, window_bounds = array<i64: 8, 128>}, {pipeline_mode = #tpu.pipeline_mode<synchronous>, transform_indices = @transform_9, window_bounds = array<i64: 16, 128>}]} {
    %c0 = arith.constant 0 : index
    %c0_0 = arith.constant 0 : index
    %0 = vector.load %arg1[%c0, %c0_0] : memref<16x128xf32, #tpu.memory_space<vmem>>, vector<16x128xf32>
    %cst = arith.constant 0.000000e+00 : f32
    %1 = vector.broadcast %cst : f32 to vector<1x128xf32>
    %c0_1 = arith.constant 0 : index
    %c0_2 = arith.constant 0 : index
    %2 = vector.load %arg11[%c0_1, %c0_2] : memref<24x128xf32, #tpu.memory_space<vmem>>, vector<1x128xf32>
    tpu.vector_store %arg11[%c0_1, %c0_2], %1 {strides = array<i32>} : memref<24x128xf32, #tpu.memory_space<vmem>>, vector<1x128xf32>,
    %c17 = arith.constant 17 : index
    %c0_3 = arith.constant 0 : index
    %3 = vector.load %arg11[%c17, %c0_3] : memref<24x128xf32, #tpu.memory_space<vmem>>, vector<1x128xf32>
    tpu.vector_store %arg11[%c17, %c0_3], %1 {strides = array<i32>} : memref<24x128xf32, #tpu.memory_space<vmem>>, vector<1x128xf32>,
    %c1 = arith.constant 1 : index
    %c0_4 = arith.constant 0 : index
    %4 = vector.load %arg11[%c1, %c0_4] : memref<24x128xf32, #tpu.memory_space<vmem>>, vector<16x128xf32>
    tpu.vector_store %arg11[%c1, %c0_4], %0 {strides = array<i32>} : memref<24x128xf32, #tpu.memory_space<vmem>>, vector<16x128xf32>,
    %c0_5 = arith.constant 0 : index
    %c0_6 = arith.constant 0 : index
    %5 = vector.load %arg11[%c0_5, %c0_6] : memref<24x128xf32, #tpu.memory_space<vmem>>, vector<16x128xf32>
    %c0_7 = arith.constant 0 : index
    %c0_8 = arith.constant 0 : index
    %c0_9 = arith.constant 0 : index
    %6 = vector.load %arg2[%c0_7, %c0_8, %c0_9] : memref<3x128x128xf32, #tpu.memory_space<vmem>>, vector<1x128x128xf32>
    %7 = vector.shape_cast %6 : vector<1x128x128xf32> to vector<128x128xf32>
    %cst_10 = arith.constant dense<0.000000e+00> : vector<16x128xf32>
    %8 = tpu.matmul %5, %7, %cst_10 {dimension_numbers = #tpu.dot_dimension_numbers<[1], [0], [0], [1], [0, 0, 1, 1], [], []>} : vector<16x128xf32>, vector<128x128xf32>, vector<16x128xf32> -> vector<16x128xf32>
    %c1_11 = arith.constant 1 : index
    %c0_12 = arith.constant 0 : index
    %9 = vector.load %arg11[%c1_11, %c0_12] : memref<24x128xf32, #tpu.memory_space<vmem>>, vector<16x128xf32>
    %c1_13 = arith.constant 1 : index
    %c0_14 = arith.constant 0 : index
    %c0_15 = arith.constant 0 : index
    %10 = vector.load %arg2[%c1_13, %c0_14, %c0_15] : memref<3x128x128xf32, #tpu.memory_space<vmem>>, vector<1x128x128xf32>
    %11 = vector.shape_cast %10 : vector<1x128x128xf32> to vector<128x128xf32>
    %cst_16 = arith.constant dense<0.000000e+00> : vector<16x128xf32>
    %12 = tpu.matmul %9, %11, %cst_16 {dimension_numbers = #tpu.dot_dimension_numbers<[1], [0], [0], [1], [0, 0, 1, 1], [], []>} : vector<16x128xf32>, vector<128x128xf32>, vector<16x128xf32> -> vector<16x128xf32>
    %13 = arith.addf %8, %12 : vector<16x128xf32>
    %c2 = arith.constant 2 : index
    %c0_17 = arith.constant 0 : index
    %14 = vector.load %arg11[%c2, %c0_17] : memref<24x128xf32, #tpu.memory_space<vmem>>, vector<16x128xf32>
    %c2_18 = arith.constant 2 : index
    %c0_19 = arith.constant 0 : index
    %c0_20 = arith.constant 0 : index
    %15 = vector.load %arg2[%c2_18, %c0_19, %c0_20] : memref<3x128x128xf32, #tpu.memory_space<vmem>>, vector<1x128x128xf32>
    %16 = vector.shape_cast %15 : vector<1x128x128xf32> to vector<128x128xf32>
    %cst_21 = arith.constant dense<0.000000e+00> : vector<16x128xf32>
    %17 = tpu.matmul %14, %16, %cst_21 {dimension_numbers = #tpu.dot_dimension_numbers<[1], [0], [0], [1], [0, 0, 1, 1], [], []>} : vector<16x128xf32>, vector<128x128xf32>, vector<16x128xf32> -> vector<16x128xf32>
    %18 = arith.addf %13, %17 : vector<16x128xf32>
    %c0_22 = arith.constant 0 : index
    %c0_23 = arith.constant 0 : index
    %19 = vector.load %arg3[%c0_22, %c0_23] : memref<1x128xf32, #tpu.memory_space<vmem>>, vector<1x128xf32>
    %20 = vector.broadcast %19 : vector<1x128xf32> to vector<16x128xf32>
    %21 = arith.addf %18, %20 : vector<16x128xf32>
    %cst_24 = arith.constant 0.000000e+00 : f32
    %22 = vector.broadcast %cst_24 : f32 to vector<16x128xf32>
    %23 = arith.maximumf %21, %22 : vector<16x128xf32>
    %c1_25 = arith.constant 1 : index
    %c0_26 = arith.constant 0 : index
    %24 = vector.load %arg11[%c1_25, %c0_26] : memref<24x128xf32, #tpu.memory_space<vmem>>, vector<16x128xf32>
    tpu.vector_store %arg11[%c1_25, %c0_26], %23 {strides = array<i32>} : memref<24x128xf32, #tpu.memory_space<vmem>>, vector<16x128xf32>,
    %c0_27 = arith.constant 0 : index
    %c0_28 = arith.constant 0 : index
    %25 = vector.load %arg11[%c0_27, %c0_28] : memref<24x128xf32, #tpu.memory_space<vmem>>, vector<16x128xf32>
    %c0_29 = arith.constant 0 : index
    %c0_30 = arith.constant 0 : index
    %c0_31 = arith.constant 0 : index
    %26 = vector.load %arg4[%c0_29, %c0_30, %c0_31] : memref<3x128x128xf32, #tpu.memory_space<vmem>>, vector<1x128x128xf32>
    %27 = vector.shape_cast %26 : vector<1x128x128xf32> to vector<128x128xf32>
    %cst_32 = arith.constant dense<0.000000e+00> : vector<16x128xf32>
    %28 = tpu.matmul %25, %27, %cst_32 {dimension_numbers = #tpu.dot_dimension_numbers<[1], [0], [0], [1], [0, 0, 1, 1], [], []>} : vector<16x128xf32>, vector<128x128xf32>, vector<16x128xf32> -> vector<16x128xf32>
    %c1_33 = arith.constant 1 : index
    %c0_34 = arith.constant 0 : index
    %29 = vector.load %arg11[%c1_33, %c0_34] : memref<24x128xf32, #tpu.memory_space<vmem>>, vector<16x128xf32>
    %c1_35 = arith.constant 1 : index
    %c0_36 = arith.constant 0 : index
    %c0_37 = arith.constant 0 : index
    %30 = vector.load %arg4[%c1_35, %c0_36, %c0_37] : memref<3x128x128xf32, #tpu.memory_space<vmem>>, vector<1x128x128xf32>
    %31 = vector.shape_cast %30 : vector<1x128x128xf32> to vector<128x128xf32>
    %cst_38 = arith.constant dense<0.000000e+00> : vector<16x128xf32>
    %32 = tpu.matmul %29, %31, %cst_38 {dimension_numbers = #tpu.dot_dimension_numbers<[1], [0], [0], [1], [0, 0, 1, 1], [], []>} : vector<16x128xf32>, vector<128x128xf32>, vector<16x128xf32> -> vector<16x128xf32>
    %33 = arith.addf %28, %32 : vector<16x128xf32>
    %c2_39 = arith.constant 2 : index
    %c0_40 = arith.constant 0 : index
    %34 = vector.load %arg11[%c2_39, %c0_40] : memref<24x128xf32, #tpu.memory_space<vmem>>, vector<16x128xf32>
    %c2_41 = arith.constant 2 : index
    %c0_42 = arith.constant 0 : index
    %c0_43 = arith.constant 0 : index
    %35 = vector.load %arg4[%c2_41, %c0_42, %c0_43] : memref<3x128x128xf32, #tpu.memory_space<vmem>>, vector<1x128x128xf32>
    %36 = vector.shape_cast %35 : vector<1x128x128xf32> to vector<128x128xf32>
    %cst_44 = arith.constant dense<0.000000e+00> : vector<16x128xf32>
    %37 = tpu.matmul %34, %36, %cst_44 {dimension_numbers = #tpu.dot_dimension_numbers<[1], [0], [0], [1], [0, 0, 1, 1], [], []>} : vector<16x128xf32>, vector<128x128xf32>, vector<16x128xf32> -> vector<16x128xf32>
    %38 = arith.addf %33, %37 : vector<16x128xf32>
    %c0_45 = arith.constant 0 : index
    %c0_46 = arith.constant 0 : index
    %39 = vector.load %arg5[%c0_45, %c0_46] : memref<1x128xf32, #tpu.memory_space<vmem>>, vector<1x128xf32>
    %40 = vector.broadcast %39 : vector<1x128xf32> to vector<16x128xf32>
    %41 = arith.addf %38, %40 : vector<16x128xf32>
    %cst_47 = arith.constant dense<0.000000e+00> : vector<128xf32>
    %42 = vector.multi_reduction <add>, %0, %cst_47 [0] : vector<16x128xf32> to vector<128xf32>
    %43 = vector.shape_cast %42 : vector<128xf32> to vector<1x128xf32>
    %c0_48 = arith.constant 0 : index
    %c0_49 = arith.constant 0 : index
    %44 = vector.load %arg8[%c0_48, %c0_49] : memref<128x8xf32, #tpu.memory_space<vmem>>, vector<128x8xf32>
    %cst_50 = arith.constant dense<0.000000e+00> : vector<1x8xf32>
    %45 = tpu.matmul %43, %44, %cst_50 {dimension_numbers = #tpu.dot_dimension_numbers<[1], [0], [0], [1], [0, 0, 1, 1], [], []>} : vector<1x128xf32>, vector<128x8xf32>, vector<1x8xf32> -> vector<1x8xf32>
    %c0_51 = arith.constant 0 : index
    %c0_52 = arith.constant 0 : index
    %46 = vector.load %arg6[%c0_51, %c0_52] : memref<8x4xf32, #tpu.memory_space<vmem>>, vector<8x4xf32>
    %cst_53 = arith.constant dense<0.000000e+00> : vector<1x4xf32>
    %47 = tpu.matmul %45, %46, %cst_53 {dimension_numbers = #tpu.dot_dimension_numbers<[1], [0], [0], [1], [0, 0, 1, 1], [], []>} : vector<1x8xf32>, vector<8x4xf32>, vector<1x4xf32> -> vector<1x4xf32>
    %cst_54 = arith.constant 0.000000e+00 : f32
    %48 = vector.broadcast %cst_54 : f32 to vector<1x4xf32>
    %49 = arith.maximumf %47, %48 : vector<1x4xf32>
    %c0_55 = arith.constant 0 : index
    %c0_56 = arith.constant 0 : index
    %50 = vector.load %arg7[%c0_55, %c0_56] : memref<4x8xf32, #tpu.memory_space<vmem>>, vector<4x8xf32>
    %cst_57 = arith.constant dense<0.000000e+00> : vector<1x8xf32>
    %51 = tpu.matmul %49, %50, %cst_57 {dimension_numbers = #tpu.dot_dimension_numbers<[1], [0], [0], [1], [0, 0, 1, 1], [], []>} : vector<1x4xf32>, vector<4x8xf32>, vector<1x8xf32> -> vector<1x8xf32>
    %52 = arith.negf %51 : vector<1x8xf32>
    %53 = math.exp %52 : vector<1x8xf32>
    %cst_58 = arith.constant 1.000000e+00 : f32
    %54 = vector.broadcast %cst_58 : f32 to vector<1x8xf32>
    %55 = arith.addf %54, %53 : vector<1x8xf32>
    %56 = arith.divf %54, %55 : vector<1x8xf32>
    %c0_59 = arith.constant 0 : index
    %c0_60 = arith.constant 0 : index
    %57 = vector.load %arg9[%c0_59, %c0_60] : memref<8x128xf32, #tpu.memory_space<vmem>>, vector<8x128xf32>
    %cst_61 = arith.constant dense<0.000000e+00> : vector<1x128xf32>
    %58 = tpu.matmul %56, %57, %cst_61 {dimension_numbers = #tpu.dot_dimension_numbers<[1], [0], [0], [1], [0, 0, 1, 1], [], []>} : vector<1x8xf32>, vector<8x128xf32>, vector<1x128xf32> -> vector<1x128xf32>
    %59 = vector.broadcast %58 : vector<1x128xf32> to vector<16x128xf32>
    %60 = arith.mulf %41, %59 : vector<16x128xf32>
    %61 = arith.addf %0, %60 : vector<16x128xf32>
    %c0_62 = arith.constant 0 : index
    %c0_63 = arith.constant 0 : index
    %62 = vector.load %arg10[%c0_62, %c0_63] : memref<16x128xf32, #tpu.memory_space<vmem>>, vector<16x128xf32>
    tpu.vector_store %arg10[%c0_62, %c0_63], %61 {strides = array<i32>} : memref<16x128xf32, #tpu.memory_space<vmem>>, vector<16x128xf32>,
    return
  }
  func.func @transform_0(%arg0: i32) -> (i32, i32) {
    %c0_i32 = arith.constant 0 : i32
    %c0_i32_0 = arith.constant 0 : i32
    %c0_i32_1 = arith.constant 0 : i32
    return %c0_i32, %c0_i32_0 : i32, i32
  }
  func.func @transform_1(%arg0: i32) -> (i32, i32, i32) {
    %c0_i32 = arith.constant 0 : i32
    %c0_i32_0 = arith.constant 0 : i32
    %c0_i32_1 = arith.constant 0 : i32
    %c0_i32_2 = arith.constant 0 : i32
    return %c0_i32, %c0_i32_0, %c0_i32_1 : i32, i32, i32
  }
  func.func @transform_2(%arg0: i32) -> (i32, i32) {
    %c0_i32 = arith.constant 0 : i32
    %c0_i32_0 = arith.constant 0 : i32
    %c0_i32_1 = arith.constant 0 : i32
    return %c0_i32, %c0_i32_0 : i32, i32
  }
  func.func @transform_3(%arg0: i32) -> (i32, i32, i32) {
    %c0_i32 = arith.constant 0 : i32
    %c0_i32_0 = arith.constant 0 : i32
    %c0_i32_1 = arith.constant 0 : i32
    %c0_i32_2 = arith.constant 0 : i32
    return %c0_i32, %c0_i32_0, %c0_i32_1 : i32, i32, i32
  }
  func.func @transform_4(%arg0: i32) -> (i32, i32) {
    %c0_i32 = arith.constant 0 : i32
    %c0_i32_0 = arith.constant 0 : i32
    %c0_i32_1 = arith.constant 0 : i32
    return %c0_i32, %c0_i32_0 : i32, i32
  }
  func.func @transform_5(%arg0: i32) -> (i32, i32) {
    %c0_i32 = arith.constant 0 : i32
    %c0_i32_0 = arith.constant 0 : i32
    %c0_i32_1 = arith.constant 0 : i32
    return %c0_i32, %c0_i32_0 : i32, i32
  }
  func.func @transform_6(%arg0: i32) -> (i32, i32) {
    %c0_i32 = arith.constant 0 : i32
    %c0_i32_0 = arith.constant 0 : i32
    %c0_i32_1 = arith.constant 0 : i32
    return %c0_i32, %c0_i32_0 : i32, i32
  }
  func.func @transform_7(%arg0: i32) -> (i32, i32) {
    %c0_i32 = arith.constant 0 : i32
    %c0_i32_0 = arith.constant 0 : i32
    %c0_i32_1 = arith.constant 0 : i32
    return %c0_i32, %c0_i32_0 : i32, i32
  }
  func.func @transform_8(%arg0: i32) -> (i32, i32) {
    %c0_i32 = arith.constant 0 : i32
    %c0_i32_0 = arith.constant 0 : i32
    %c0_i32_1 = arith.constant 0 : i32
    return %c0_i32, %c0_i32_0 : i32, i32
  }
  func.func @transform_9(%arg0: i32) -> (i32, i32) {
    %c0_i32 = arith.constant 0 : i32
    %c0_i32_0 = arith.constant 0 : i32
    %c0_i32_1 = arith.constant 0 : i32
    return %c0_i32, %c0_i32_0 : i32, i32
  }
}

</mosaic_0001>

<bundles_post_ra>
// kernel: se_resblock_apply.1
= control target key start
LH: loop header
LB: loop body
LE: loop exit
PB: predicated region body
PF: predicated region fallthrough
CT: control target
= control target key end

     0   :  { %14 = vsyncpa [#allocation4], 0  ;;  %s1671_s30 = smov [#allocation3]   ;;  %s1985_s0 = inlined_call_operand.vmem [shape: f32[16,128], index: 0, kind: input, shape index: {}]   ;;  %s1986_s1 = inlined_call_operand.vmem [shape: f32[3,128,128], index: 1, kind: input, shape index: {}]   ;;  %s1987_s2 = inlined_call_operand.vmem [shape: f32[1,128], index: 2, kind: input, shape index: {}]   ;;  %s1988_s3 = inlined_call_operand.hbm [shape: f32[3,128,128], index: 3, kind: input, shape index: {}]   ;;  %s1989_s4 = inlined_call_operand.vmem [shape: f32[1,128], index: 4, kind: input, shape index: {}]   ;;  %s1990_s5 = inlined_call_operand.vmem [shape: f32[8,4], index: 5, kind: input, shape index: {}]   ;;  %s1991_s6 = inlined_call_operand.vmem [shape: f32[4,8], index: 6, kind: input, shape index: {}]   ;;  %s1992_s7 = inlined_call_operand.vmem [shape: f32[128,8], index: 7, kind: input, shape index: {}]   ;;  %s1993_s8 = inlined_call_operand.vmem [shape: f32[8,128], index: 8, kind: input, shape index: {}]   ;;  %s1994_s9 = inlined_call_operand.vmem [shape: f32[16,128], index: 9, kind: output, shape index: {}]  }
   0x1   :  { %s26_s10 = sshll.u32 %s1671_s30, 4  ;;  %s1647_s13 = scalar_lea.hbm %s1988_s3, 6144  ;;  %s27_s10 = int_to_ptr.vmem [resolvable:$true] %s26_s10 }
   0x2   :  { %p1648_p0 = scmp.ne.s32.totalorder %s1988_s3, %s1647_s13  ;;  %p1651_p1 = scmp.lt.u32.totalorder %s1647_s13, %s1988_s3 }
   0x4   :  { %p1653_p2 = pnand %p1651_p1, %p1648_p0 }
   0x6   :  { %1656 = shalt.err (!%p1653_p2)
}
   0x7   :  { %s1657_s18 = scalar_lea.vmem %s27_s10, 6144  ;;  %p1662_p4 = scmp.lt.s32.totalorder %s27_s10, %s27_s10 }
   0x8   :  { %p1658_p3 = scmp.ne.s32.totalorder %s27_s10, %s1657_s18  ;;  %p1663_p5 = scmp.lt.s32.totalorder %s1657_s18, %s1657_s18 }
   0xa   :  { %p1664_p6 = por %p1663_p5, %p1662_p4 }
   0xc   :  { %p1665_p7 = pnand %p1664_p6, %p1658_p3 }
   0xe   :  { %1668 = shalt.err (!%p1665_p7)
}
   0xf   :  { %s1672_s19 = smov 128   ;;  %s1673_s20 = smov 8  }
  0x10   :  { %32 = dma.hbm_to_vmem [thread:$0]  %s1988_s3, 6144, %s27_s10, [#allocation4], %s1672_s19, %s1672_s19, %s1673_s20  }
  0x11   :  { %1669 = dma.done.wait [#allocation4], 6144  }
  0x12   :  { %1670 = vsyncadd [#allocation4], 4294961152  ;;  %v1674_v0 = vmov 0.0   ;;  %v983_v1 = vld [vmem:[%s1986_s1 + $0x80] sm:$0xff]  ;;  %v984_v2 = vld [vmem:[%s1986_s1 + $0x88] sm:$0xff]  ;;  %vm1676_vm0 = vmmov 0  }
  0x13   :  { %48 = vst [vmem:[#allocation2] sm:$0x1] %v1674_v0  ;;  %49 = vst [vmem:[#allocation2 + $0x11] sm:$0x1] %v1674_v0  ;;  %v985_v3 = vld [vmem:[%s1986_s1 + $0x90] sm:$0xff]  ;;  %v1413_v4 = vpack.c.bf16 %v984_v2, %v983_v1  ;;  %v986_v5 = vld [vmem:[%s1986_s1 + $0x98] sm:$0xff] }
  0x14   :  { %v1417_v6 = vpack.c.bf16 %v986_v5, %v985_v3  ;;  %v987_v7 = vld [vmem:[%s1986_s1 + $0xa0] sm:$0xff]  ;;  %v988_v8 = vld [vmem:[%s1986_s1 + $0xa8] sm:$0xff]  ;;  %v989_v11 = vld [vmem:[%s1986_s1 + $0xb0] sm:$0xff]  ;;  %vm734_vm1 = vcmask 64512   ;;  %vm814_vm2 = vcmask 1043456   ;;  %vm810_vm3 = vcmask 31744  }
  0x15   :  { %1414 = vmatprep.subr.bf16.mxu0 %v1413_v4  ;;  %v1421_v9 = vpack.c.bf16 %v988_v8, %v987_v7  ;;  %v1762_v10 = vld [vmem:[%s1985_s0] sm:$0xff]  ;;  %v990_v12 = vld [vmem:[%s1986_s1 + $0xb8] sm:$0xff]  ;;  %v1775_v13 = vld [vmem:[%s1985_s0 + $0x8] sm:$0xff] }
  0x16   :  { %1416 = vmatpush3.bf16.msra.mxu0 %v1413_v4  ;;  %50 = vst [vmem:[#allocation2 + $0x1] sm:$0xff] %v1762_v10  ;;  %1185 = vmatprep.mubr.f32.mxu0 %v1762_v10  ;;  %51 = vst [vmem:[#allocation2 + $0x9] sm:$0xff] %v1775_v13  ;;  %v1425_v14 = vpack.c.bf16 %v990_v12, %v989_v11  ;;  %v991_v15 = vld [vmem:[%s1986_s1 + $0xc0] sm:$0xff]  ;;  %v992_v16 = vld [vmem:[%s1986_s1 + $0xc8] sm:$0xff] }
  0x17   :  { %1418 = vmatprep.subr.bf16.mxu0 %v1417_v6  ;;  %v1429_v17 = vpack.c.bf16 %v992_v16, %v991_v15  ;;  %v993_v18 = vld [vmem:[%s1986_s1 + $0xd0] sm:$0xff]  ;;  %v994_v19 = vld [vmem:[%s1986_s1 + $0xd8] sm:$0xff]  ;;  %v995_v21 = vld [vmem:[%s1986_s1 + $0xe0] sm:$0xff] }
  0x18   :  { %v1433_v20 = vpack.c.bf16 %v994_v19, %v993_v18  ;;  %v996_v22 = vld [vmem:[%s1986_s1 + $0xe8] sm:$0xff]  ;;  %v997_v24 = vld [vmem:[%s1986_s1 + $0xf0] sm:$0xff]  ;;  %v998_v25 = vld [vmem:[%s1986_s1 + $0xf8] sm:$0xff] }
  0x19   :  { %v1437_v23 = vpack.c.bf16 %v996_v22, %v995_v21  ;;  %v369_v26 = vld [vmem:[#allocation3 + $0x80] sm:$0xff]  ;;  %v370_v27 = vld [vmem:[#allocation3 + $0x88] sm:$0xff]  ;;  %v371_v29 = vld [vmem:[#allocation3 + $0x90] sm:$0xff]  ;;  %v1441_v31 = vpack.c.bf16 %v998_v25, %v997_v24 }
  0x1a   :  { %1420 = vmatpush3.bf16.msra.mxu0 %v1417_v6  ;;  %v1509_v28 = vpack.c.bf16 %v370_v27, %v369_v26  ;;  %v372_v30 = vld [vmem:[#allocation3 + $0x98] sm:$0xff]  ;;  %v373_v33 = vld [vmem:[#allocation3 + $0xa0] sm:$0xff]  ;;  %v374_v34 = vld [vmem:[#allocation3 + $0xa8] sm:$0xff] }
  0x1b   :  { %1422 = vmatprep.subr.bf16.mxu0 %v1421_v9  ;;  %v1513_v32 = vpack.c.bf16 %v372_v30, %v371_v29  ;;  %v54_v35 = vld [vmem:[%s1986_s1] sm:$0xff]  ;;  %v55_v36 = vld [vmem:[%s1986_s1 + $0x8] sm:$0xff]  ;;  %v1517_v37 = vpack.c.bf16 %v374_v34, %v373_v33  ;;  %v56_v39 = vld [vmem:[%s1986_s1 + $0x10] sm:$0xff] }
  0x1c   :  { %1510 = vmatprep.subr.bf16.mxu1 %v1509_v28  ;;  %v1445_v38 = vpack.c.bf16 %v55_v36, %v54_v35  ;;  %v57_v40 = vld [vmem:[%s1986_s1 + $0x18] sm:$0xff]  ;;  %v375_v41 = vld [vmem:[#allocation3 + $0xb0] sm:$0xff]  ;;  %v376_v42 = vld [vmem:[#allocation3 + $0xb8] sm:$0xff]  ;;  %v1675_v36 = vmov 0.0|0.0  }
  0x1d   :  { %1512 = vmatpush3.bf16.msra.mxu1 %v1509_v28  ;;  %v1449_v43 = vpack.c.bf16 %v57_v40, %v56_v39  ;;  %v52_v44 = vld [vmem:[#allocation2] sm:$0xff]  ;;  %v1521_v45 = vpack.c.bf16 %v376_v42, %v375_v41  ;;  %v377_v46 = vld [vmem:[#allocation3 + $0xc0] sm:$0xff]  ;;  %v59_v49 = vld [vmem:[%s1986_s1 + $0x28] sm:$0xff]  ;;  %v640_v42 = vadd.f32 %v1775_v13, %v1762_v10 }
  0x1e   :  { %1424 = vmatpush3.bf16.msra.mxu0 %v1421_v9  ;;  %1514 = vmatprep.subr.bf16.mxu1 %v1513_v32  ;;  %v378_v47 = vld [vmem:[#allocation3 + $0xc8] sm:$0xff]  ;;  %v60_v52 = vld [vmem:[%s1986_s1 + $0x30] sm:$0xff]  ;;  %v61_v53 = vld [vmem:[%s1986_s1 + $0x38] sm:$0xff] }
  0x1f   :  { %1426 = vmatprep.subr.bf16.mxu0 %v1425_v14  ;;  %v58_v48 = vld [vmem:[%s1986_s1 + $0x20] sm:$0xff]  ;;  %v1525_v50 = vpack.c.bf16 %v378_v47, %v377_v46  ;;  %v1457_v54 = vpack.c.bf16 %v61_v53, %v60_v52  ;;  %v63_v56 = vld [vmem:[%s1986_s1 + $0x48] sm:$0xff]  ;;  %v64_v58 = vld [vmem:[%s1986_s1 + $0x50] sm:$0xff]  ;;  %v641_v46 = vrot.slane %v640_v42, 4 }
  0x20   :  { %v1453_v51 = vpack.c.bf16 %v59_v49, %v58_v48  ;;  %v62_v55 = vld [vmem:[%s1986_s1 + $0x40] sm:$0xff]  ;;  %v65_v59 = vld [vmem:[%s1986_s1 + $0x58] sm:$0xff]  ;;  %v67_v62 = vld [vmem:[%s1986_s1 + $0x68] sm:$0xff] }
  0x21   :  { %1516 = vmatpush3.bf16.msra.mxu1 %v1513_v32  ;;  %v1461_v57 = vpack.c.bf16 %v63_v56, %v62_v55  ;;  %v1465_v60 = vpack.c.bf16 %v65_v59, %v64_v58  ;;  %v66_v61 = vld [vmem:[%s1986_s1 + $0x60] sm:$0xff]  ;;  %v68_v1 = vld [vmem:[%s1986_s1 + $0x70] sm:$0xff]  ;;  %v69_v2 = vld [vmem:[%s1986_s1 + $0x78] sm:$0xff] }
  0x22   :  { %1428 = vmatpush3.bf16.msra.mxu0 %v1425_v14  ;;  %1518 = vmatprep.subr.bf16.mxu1 %v1517_v37  ;;  %v1469_v63 = vpack.c.bf16 %v67_v62, %v66_v61  ;;  %v1473_v3 = vpack.c.bf16 %v69_v2, %v68_v1  ;;  %v999_v4 = vld [vmem:[%s1986_s1 + $0x100] sm:$0xff]  ;;  %v1000_v5 = vld [vmem:[%s1986_s1 + $0x108] sm:$0xff]  ;;  %v1001_v7 = vld [vmem:[%s1986_s1 + $0x110] sm:$0xff] }
  0x23   :  { %1430 = vmatprep.subr.bf16.mxu0 %v1429_v17  ;;  %v1477_v6 = vpack.c.bf16 %v1000_v5, %v999_v4  ;;  %v1002_v8 = vld [vmem:[%s1986_s1 + $0x118] sm:$0xff]  ;;  %v53_v9 = vld [vmem:[#allocation2 + $0x8] sm:$0xff]  ;;  %v1003_v14 = vld [vmem:[%s1986_s1 + $0x120] sm:$0xff] }
  0x24   :  { %v1481_v11 = vpack.c.bf16 %v1002_v8, %v1001_v7  ;;  %v239_v12 = vld [vmem:[#allocation2 + $0x2] sm:$0xff]  ;;  %v1006_v18 = vld [vmem:[%s1986_s1 + $0x138] sm:$0xff]  ;;  %v1013_v29 = vld [vmem:[%s1986_s1 + $0x170] sm:$0xff] }
  0x25   :  { %1520 = vmatpush3.bf16.msra.mxu1 %v1517_v37  ;;  %v1004_v15 = vld [vmem:[%s1986_s1 + $0x128] sm:$0xff]  ;;  %v1010_v24 = vld [vmem:[%s1986_s1 + $0x158] sm:$0xff]  ;;  %v1011_v26 = vld [vmem:[%s1986_s1 + $0x160] sm:$0xff] }
  0x26   :  { %1432 = vmatpush3.bf16.msra.mxu0 %v1429_v17  ;;  %1522 = vmatprep.subr.bf16.mxu1 %v1521_v45  ;;  %v1485_v16 = vpack.c.bf16 %v1004_v15, %v1003_v14  ;;  %v1005_v17 = vld [vmem:[%s1986_s1 + $0x130] sm:$0xff]  ;;  %v1008_v21 = vld [vmem:[%s1986_s1 + $0x148] sm:$0xff]  ;;  %v1014_v30 = vld [vmem:[%s1986_s1 + $0x178] sm:$0xff] }
  0x27   :  { %1434 = vmatprep.subr.bf16.mxu0 %v1433_v20  ;;  %v1489_v19 = vpack.c.bf16 %v1006_v18, %v1005_v17  ;;  %v1012_v27 = vld [vmem:[%s1986_s1 + $0x168] sm:$0xff]  ;;  %v647_v32 = vld [vmem:[%s1992_s7] sm:$0xff]  ;;  %v649_v37 = vld [vmem:[%s1992_s7 + $0x10] sm:$0xff] }
  0x28   :  { %v1501_v28 = vpack.c.bf16 %v1012_v27, %v1011_v26  ;;  %v648_v33 = vld [vmem:[%s1992_s7 + $0x8] sm:$0xff]  ;;  %v651_v40 = vld [vmem:[%s1992_s7 + $0x20] sm:$0xff]  ;;  %v657_v52 = vld [vmem:[%s1992_s7 + $0x50] sm:$0xff] }
  0x29   :  { %1524 = vmatpush3.bf16.msra.mxu1 %v1521_v45  ;;  %v240_v34 = vld [vmem:[#allocation2 + $0xa] sm:$0xff]  ;;  %v1606_v35 = vpack.c.bf16 %v648_v33, %v647_v32  ;;  %v654_v45 = vld [vmem:[%s1992_s7 + $0x38] sm:$0xff]  ;;  %v655_v48 = vld [vmem:[%s1992_s7 + $0x40] sm:$0xff] }
  0x2a   :  { %1436 = vmatpush3.bf16.msra.mxu0 %v1433_v20  ;;  %1526 = vmatprep.subr.bf16.mxu1 %v1525_v50  ;;  %v1007_v20 = vld [vmem:[%s1986_s1 + $0x140] sm:$0xff]  ;;  %v652_v41 = vld [vmem:[%s1992_s7 + $0x28] sm:$0xff]  ;;  %v658_v53 = vld [vmem:[%s1992_s7 + $0x58] sm:$0xff] }
  0x2b   :  { %1438 = vmatprep.subr.bf16.mxu0 %v1437_v23  ;;  %v1493_v22 = vpack.c.bf16 %v1008_v21, %v1007_v20  ;;  %v656_v49 = vld [vmem:[%s1992_s7 + $0x48] sm:$0xff]  ;;  %v1621_v55 = vpack.c.bf16 %v658_v53, %v657_v52  ;;  %v659_v56 = vld [vmem:[%s1992_s7 + $0x60] sm:$0xff]  ;;  %v662_v61 = vld [vmem:[%s1992_s7 + $0x78] sm:$0xff] }
  0x2c   :  { %v379_v2 = vld [vmem:[#allocation3 + $0xd0] sm:$0xff]  ;;  %v381_v5 = vld [vmem:[#allocation3 + $0xe0] sm:$0xff]  ;;  %v351_v14 = vld [vmem:[#allocation3 + $0x8] sm:$0xff] }
  0x2d   :  { %1528 = vmatpush3.bf16.msra.mxu1 %v1525_v50  ;;  %v642_v50 = vadd.f32 %v641_v46, %v640_v42  ;;  %v383_v8 = vld [vmem:[#allocation3 + $0xf0] sm:$0xff]  ;;  %v354_v26 = vld [vmem:[#allocation3 + $0x20] sm:$0xff]  ;;  %v355_v27 = vld [vmem:[#allocation3 + $0x28] sm:$0xff] }
  0x2e   :  { %1440 = vmatpush3.bf16.msra.mxu0 %v1437_v23  ;;  %v1009_v23 = vld [vmem:[%s1986_s1 + $0x150] sm:$0xff]  ;;  %v352_v21 = vld [vmem:[#allocation3 + $0x10] sm:$0xff]  ;;  %v358_v33 = vld [vmem:[#allocation3 + $0x40] sm:$0xff] }
  0x2f   :  { %1442 = vmatprep.subr.bf16.mxu0 %v1441_v31  ;;  %v1497_v25 = vpack.c.bf16 %v1010_v24, %v1009_v23  ;;  %v364_v42 = vld [vmem:[#allocation3 + $0x70] sm:$0xff]  ;;  %v539_v46 = vld [vmem:[#allocation3 + $0x108] sm:$0xff] }
  0x32   :  { %1444 = vmatpush3.bf16.msra.mxu0 %v1441_v31  ;;  %v1505_v31 = vpack.c.bf16 %v1014_v30, %v1013_v29  ;;  %v356_v29 = vld [vmem:[#allocation3 + $0x30] sm:$0xff]  ;;  %v357_v30 = vld [vmem:[#allocation3 + $0x38] sm:$0xff] }
  0x33   :  { %1446 = vmatprep.subr.bf16.mxu0 %v1445_v38  ;;  %v1553_v32 = vpack.c.bf16 %v357_v30, %v356_v29 }
  0x35   :  { %1186 = vmatmul.mubr.f32.vlgmr.msra.gmra.mrb[0].mxu0 %v1775_v13 }
  0x36   :  { %1448 = vmatpush3.bf16.msra.mxu0 %v1445_v38  ;;  %1220 = vmatprep.mubr.f32.mxu0 %v52_v44  ;;  %v650_v38 = vld [vmem:[%s1992_s7 + $0x18] sm:$0xff]  ;;  %v653_v44 = vld [vmem:[%s1992_s7 + $0x30] sm:$0xff] }
  0x37   :  { %1450 = vmatprep.subr.bf16.mxu0 %v1449_v43  ;;  %v1609_v39 = vpack.c.bf16 %v650_v38, %v649_v37  ;;  %v1615_v47 = vpack.c.bf16 %v654_v45, %v653_v44  ;;  %v361_v37 = vld [vmem:[#allocation3 + $0x58] sm:$0xff]  ;;  %v538_v45 = vld [vmem:[#allocation3 + $0x100] sm:$0xff] }
  0x3a   :  { %1452 = vmatpush3.bf16.msra.mxu0 %v1449_v43  ;;  %v1612_v43 = vpack.c.bf16 %v652_v41, %v651_v40  ;;  %v363_v40 = vld [vmem:[#allocation3 + $0x68] sm:$0xff] }
  0x3b   :  { %1454 = vmatprep.subr.bf16.mxu0 %v1453_v51 }
  0x3e   :  { %1456 = vmatpush3.bf16.msra.mxu0 %v1453_v51  ;;  %v1618_v51 = vpack.c.bf16 %v656_v49, %v655_v48  ;;  %v1573_v48 = vpack.c.bf16 %v539_v46, %v538_v45 }
  0x3f   :  { %1458 = vmatprep.subr.bf16.mxu0 %v1457_v54 }
  0x42   :  { %1460 = vmatpush3.bf16.msra.mxu0 %v1457_v54  ;;  %v643_v54 = vrot.slane %v642_v50, 2 }
  0x43   :  { %1462 = vmatprep.subr.bf16.mxu0 %v1461_v57 }
  0x44   :  { %v644_v58 = vadd.f32 %v643_v54, %v642_v50  ;;  %v540_v50 = vld [vmem:[#allocation3 + $0x110] sm:$0xff]  ;;  %v542_v54 = vld [vmem:[#allocation3 + $0x120] sm:$0xff] }
  0x46   :  { %1464 = vmatpush3.bf16.msra.mxu0 %v1461_v57  ;;  %v660_v57 = vld [vmem:[%s1992_s7 + $0x68] sm:$0xff]  ;;  %v645_v62 = vrot.slane %v644_v58, 1 }
  0x47   :  { %1466 = vmatprep.subr.bf16.mxu0 %v1465_v60  ;;  %v1624_v59 = vpack.c.bf16 %v660_v57, %v659_v56 }
  0x48   :  { %v646_v1 = vadd.f32 %v645_v62, %v644_v58  ;;  %v544_v58 = vld [vmem:[#allocation3 + $0x130] sm:$0xff]  ;;  %v547_v62 = vld [vmem:[#allocation3 + $0x148] sm:$0xff] }
  0x4a   :  { %1468 = vmatpush3.bf16.msra.mxu0 %v1465_v60  ;;  %v661_v60 = vld [vmem:[%s1992_s7 + $0x70] sm:$0xff] }
  0x4b   :  { %1470 = vmatprep.subr.bf16.mxu0 %v1469_v63 }
  0x4e   :  { %1472 = vmatpush3.bf16.msra.mxu0 %v1469_v63  ;;  %v1627_v63 = vpack.c.bf16 %v662_v61, %v661_v60  ;;  %v546_v61 = vld [vmem:[#allocation3 + $0x140] sm:$0xff] }
  0x4f   :  { %1474 = vmatprep.subr.bf16.mxu0 %v1473_v3 }
  0x52   :  { %1476 = vmatpush3.bf16.msra.mxu0 %v1473_v3  ;;  %v380_v3 = vld [vmem:[#allocation3 + $0xd8] sm:$0xff] }
  0x53   :  { %1478 = vmatprep.subr.bf16.mxu0 %v1477_v6  ;;  %v1529_v4 = vpack.c.bf16 %v380_v3, %v379_v2  ;;  %v549_v2 = vld [vmem:[#allocation3 + $0x158] sm:$0xff] }
  0x55   :  { %1221 = vmatmul.mubr.f32.vlgmr.msra.gmra.mrb[0].mxu0 %v53_v9  ;;  %1530 = vmatprep.subr.bf16.mxu1 %v1529_v4  ;;  %v384_v9 = vld [vmem:[#allocation3 + $0xf8] sm:$0xff] }
  0x56   :  { %1480 = vmatpush3.bf16.msra.mxu0 %v1477_v6  ;;  %1255 = vmatprep.mubr.f32.mxu0 %v239_v12  ;;  %v382_v6 = vld [vmem:[#allocation3 + $0xe8] sm:$0xff]  ;;  %v350_v12 = vld [vmem:[#allocation3] sm:$0xff] }
  0x57   :  { %1482 = vmatprep.subr.bf16.mxu0 %v1481_v11  ;;  %1532 = vmatpush3.bf16.msra.mxu1 %v1529_v4  ;;  %v1533_v7 = vpack.c.bf16 %v382_v6, %v381_v5  ;;  %v1541_v15 = vpack.c.bf16 %v351_v14, %v350_v12  ;;  %v550_v4 = vld [vmem:[#allocation3 + $0x160] sm:$0xff]  ;;  %v551_v5 = vld [vmem:[#allocation3 + $0x168] sm:$0xff] }
  0x58   :  { %v1597_v6 = vpack.c.bf16 %v551_v5, %v550_v4  ;;  %v809_v14 = vld [vmem:[%s1991_s6] sm:$0xf] }
  0x59   :  { %1534 = vmatprep.subr.bf16.mxu1 %v1533_v7 }
  0x5a   :  { %1484 = vmatpush3.bf16.msra.mxu0 %v1481_v11  ;;  %v1537_v11 = vpack.c.bf16 %v384_v9, %v383_v8  ;;  %v553_v8 = vld [vmem:[#allocation3 + $0x178] sm:$0xff] }
  0x5b   :  { %1486 = vmatprep.subr.bf16.mxu0 %v1485_v16  ;;  %1536 = vmatpush3.bf16.msra.mxu1 %v1533_v7  ;;  %v552_v7 = vld [vmem:[#allocation3 + $0x170] sm:$0xff] }
  0x5c   :  { %1538 = vmatprep.subr.bf16.mxu1 %v1537_v11  ;;  %v1601_v9 = vpack.c.bf16 %v553_v8, %v552_v7 }
  0x5e   :  { %1488 = vmatpush3.bf16.msra.mxu0 %v1485_v16  ;;  %v1015_v16 = vld [vmem:[%s1987_s2] ss:$0 sm:$0xff] }
  0x5f   :  { %1490 = vmatprep.subr.bf16.mxu0 %v1489_v19  ;;  %1540 = vmatpush3.bf16.msra.mxu1 %v1537_v11  ;;  %v733_v11 = vld [vmem:[%s1990_s5] sm:$0xff] }
  0x60   :  { %1542 = vmatprep.subr.bf16.mxu1 %v1541_v15 }
  0x62   :  { %1492 = vmatpush3.bf16.msra.mxu0 %v1489_v19 }
  0x63   :  { %1494 = vmatprep.subr.bf16.mxu0 %v1493_v22 }
  0x66   :  { %1496 = vmatpush3.bf16.msra.mxu0 %v1493_v22  ;;  %v353_v22 = vld [vmem:[#allocation3 + $0x18] sm:$0xff] }
  0x67   :  { %1498 = vmatprep.subr.bf16.mxu0 %v1497_v25 }
  0x6a   :  { %1500 = vmatpush3.bf16.msra.mxu0 %v1497_v25  ;;  %v1545_v25 = vpack.c.bf16 %v353_v22, %v352_v21 }
  0x6b   :  { %1502 = vmatprep.subr.bf16.mxu0 %v1501_v28 }
  0x6e   :  { %1504 = vmatpush3.bf16.msra.mxu0 %v1501_v28  ;;  %v1549_v28 = vpack.c.bf16 %v355_v27, %v354_v26  ;;  %v968_v27 = vlaneseq }
  0x6f   :  { %1506 = vmatprep.subr.bf16.mxu0 %v1505_v31 }
  0x72   :  { %1508 = vmatpush3.bf16.msra.mxu0 %v1505_v31 }
  0x73   :  { %1605 = vmatprep.subr.bf16.mxu0 %v1675_v36 }
  0x75   :  { %1256 = vmatmul.mubr.f32.vlgmr.msra.gmra.mrb[0].mxu0 %v240_v34  ;;  %v359_v34 = vld [vmem:[#allocation3 + $0x48] sm:$0xff] }
  0x76   :  { %1607 = vmatpush3.bf16.msra.mxu0 %v1606_v35  ;;  %1395 = vmatprep.mubr.msk.f32.mxu0 %vm1676_vm0, %v1674_v0  ;;  %v1557_v35 = vpack.c.bf16 %v359_v34, %v358_v33 }
  0x77   :  { %1608 = vmatprep.subr.bf16.mxu0 %v1675_v36 }
  0x7a   :  { %1610 = vmatpush3.bf16.msra.mxu0 %v1609_v39  ;;  %v362_v39 = vld [vmem:[#allocation3 + $0x60] sm:$0xff] }
  0x7b   :  { %1611 = vmatprep.subr.bf16.mxu0 %v1675_v36  ;;  %v1565_v41 = vpack.c.bf16 %v363_v40, %v362_v39 }
  0x7e   :  { %1613 = vmatpush3.bf16.msra.mxu0 %v1612_v43  ;;  %v365_v43 = vld [vmem:[#allocation3 + $0x78] sm:$0xff] }
  0x7f   :  { %1614 = vmatprep.subr.bf16.mxu0 %v1675_v36  ;;  %v1569_v44 = vpack.c.bf16 %v365_v43, %v364_v42 }
  0x82   :  { %1616 = vmatpush3.bf16.msra.mxu0 %v1615_v47 }
  0x83   :  { %1617 = vmatprep.subr.bf16.mxu0 %v1675_v36 }
  0x86   :  { %1619 = vmatpush3.bf16.msra.mxu0 %v1618_v51  ;;  %v541_v51 = vld [vmem:[#allocation3 + $0x118] sm:$0xff] }
  0x87   :  { %1620 = vmatprep.subr.bf16.mxu0 %v1675_v36  ;;  %v1577_v52 = vpack.c.bf16 %v541_v51, %v540_v50 }
  0x8a   :  { %1622 = vmatpush3.bf16.msra.mxu0 %v1621_v55  ;;  %v543_v55 = vld [vmem:[#allocation3 + $0x128] sm:$0xff] }
  0x8b   :  { %1623 = vmatprep.subr.bf16.mxu0 %v1675_v36  ;;  %v1581_v57 = vpack.c.bf16 %v543_v55, %v542_v54 }
  0x8e   :  { %1625 = vmatpush3.bf16.msra.mxu0 %v1624_v59  ;;  %v545_v59 = vld [vmem:[#allocation3 + $0x138] sm:$0xff] }
  0x8f   :  { %1626 = vmatprep.subr.bf16.mxu0 %v1675_v36  ;;  %v360_v36 = vld [vmem:[#allocation3 + $0x50] sm:$0xff]  ;;  %v1585_v60 = vpack.c.bf16 %v545_v59, %v544_v58 }
  0x90   :  { %v1561_v38 = vpack.c.bf16 %v361_v37, %v360_v36 }
  0x92   :  { %1628 = vmatpush3.bf16.msra.mxu0 %v1627_v63  ;;  %v1589_v63 = vpack.c.bf16 %v547_v62, %v546_v61 }
  0x95   :  { %1396 = vmatmul.mubr.f32.vlgmr.msra.gmra.mrb[2].mxu0 %v646_v1  ;;  %v548_v1 = vld [vmem:[#allocation3 + $0x150] sm:$0xff] }
  0x96   :  { %v1593_v3 = vpack.c.bf16 %v549_v2, %v548_v1 }
 0x148   :  { %v1257_v17 = vpop.f32.mrb[0].mxu0 }
 0x149   :  { %v343_v18 = vadd.f32 %v1257_v17, %v1015_v16  ;;  %v324_v19 = vpop.f32.mrb[1].mxu0 }
 0x14a   :  { %v342_v20 = vadd.f32 %v1015_v16, %v324_v19 }
 0x14b   :  { %v345_v23 = vmax.f32 %v343_v18, 0.0 }
 0x14c   :  { %v344_v24 = vmax.f32 %v342_v20, 0.0  ;;  %v894_v20 = vld [vmem:[%s1993_s8] sm:$0xff] }
 0x14d   :  { %347 = vst [vmem:[#allocation2 + $0x9] sm:$0xff] %v345_v23 }
 0x14e   :  { %346 = vst [vmem:[#allocation2 + $0x1] sm:$0xff] %v344_v24  ;;  %1290 = vmatprep.mubr.f32.mxu1 %v344_v24 }
 0x14f   :  { %1291 = vmatmul.mubr.f32.vlgmr.msra.gmra.mrb[0].mxu1 %v345_v23 }
 0x150   :  { %1544 = vmatpush3.bf16.msra.mxu1 %v1541_v15 }
 0x151   :  { %1546 = vmatprep.subr.bf16.mxu1 %v1545_v25 }
 0x154   :  { %1548 = vmatpush3.bf16.msra.mxu1 %v1545_v25  ;;  %v536_v12 = vld [vmem:[#allocation2 + $0xa] sm:$0xff] }
 0x155   :  { %v348_v31 = vld [vmem:[#allocation2] sm:$0xff]  ;;  %1550 = vmatprep.subr.bf16.mxu1 %v1549_v28  ;;  %v349_v53 = vld [vmem:[#allocation2 + $0x8] sm:$0xff] }
 0x156   :  { %1325 = vmatprep.mubr.f32.mxu1 %v348_v31  ;;  %v535_v56 = vld [vmem:[#allocation2 + $0x2] sm:$0xff] }
 0x158   :  { %1552 = vmatpush3.bf16.msra.mxu1 %v1549_v28  ;;  %v969_v28 = vshrl.u32 %v968_v27, 7 }
 0x159   :  { %1554 = vmatprep.subr.bf16.mxu1 %v1553_v32 }
 0x15a   :  { %v970_v29 = vsub.s32 0, %v969_v28 }
 0x15c   :  { %1556 = vmatpush3.bf16.msra.mxu1 %v1553_v32 }
 0x15d   :  { %1558 = vmatprep.subr.bf16.mxu1 %v1557_v35 }
 0x160   :  { %1560 = vmatpush3.bf16.msra.mxu1 %v1557_v35 }
 0x161   :  { %1562 = vmatprep.subr.bf16.mxu1 %v1561_v38 }
 0x164   :  { %1564 = vmatpush3.bf16.msra.mxu1 %v1561_v38 }
 0x165   :  { %1566 = vmatprep.subr.bf16.mxu1 %v1565_v41 }
 0x168   :  { %1568 = vmatpush3.bf16.msra.mxu1 %v1565_v41  ;;  %v729_v47 = vpop.f32.mrb[2].mxu0 }
 0x169   :  { %1570 = vmatprep.subr.bf16.mxu1 %v1569_v44  ;;  %v1397_v49 = vpop.f32.mrb[3].mxu0 }
 0x16c   :  { %1572 = vmatpush3.bf16.msra.mxu1 %v1569_v44 }
 0x16d   :  { %1574 = vmatprep.subr.bf16.mxu1 %v1573_v48 }
 0x16f   :  { %1326 = vmatmul.mubr.f32.vlgmr.msra.gmra.mrb[0].mxu1 %v349_v53 }
 0x170   :  { %1576 = vmatpush3.bf16.msra.mxu1 %v1573_v48  ;;  %1360 = vmatprep.mubr.f32.mxu1 %v535_v56 }
 0x171   :  { %1578 = vmatprep.subr.bf16.mxu1 %v1577_v52 }
 0x174   :  { %1580 = vmatpush3.bf16.msra.mxu1 %v1577_v52 }
 0x175   :  { %1582 = vmatprep.subr.bf16.mxu1 %v1581_v57 }
 0x178   :  { %1584 = vmatpush3.bf16.msra.mxu1 %v1581_v57 }
 0x179   :  { %1586 = vmatprep.subr.bf16.mxu1 %v1585_v60 }
 0x17c   :  { %1588 = vmatpush3.bf16.msra.mxu1 %v1585_v60 }
 0x17d   :  { %1590 = vmatprep.subr.bf16.mxu1 %v1589_v63 }
 0x180   :  { %1592 = vmatpush3.bf16.msra.mxu1 %v1589_v63 }
 0x181   :  { %1594 = vmatprep.subr.bf16.mxu1 %v1593_v3 }
 0x184   :  { %1596 = vmatpush3.bf16.msra.mxu1 %v1593_v3 }
 0x185   :  { %1598 = vmatprep.subr.bf16.mxu1 %v1597_v6 }
 0x188   :  { %1600 = vmatpush3.bf16.msra.mxu1 %v1597_v6 }
 0x189   :  { %1602 = vmatprep.subr.bf16.mxu1 %v1601_v9 }
 0x18c   :  { %1604 = vmatpush3.bf16.msra.mxu1 %v1601_v9 }
 0x18d   :  { %1398 = vmatprep.subr.mxu1 %v1674_v0 }
 0x18f   :  { %1361 = vmatmul.mubr.f32.vlgmr.msra.gmra.mrb[0].mxu1 %v536_v12 }
 0x190   :  { %1399 = vmatpush3.msra.mxu1 %v733_v11  ;;  %1400 = vmatprep.mubr.msk.f32.mxu1 %vm1676_vm0, %v1674_v0 }
 0x191   :  { %1403 = vmatprep.subr.mxu1 %v1674_v0 }
 0x193   :  { %1401 = vmatmul.mubr.msk.f32.vlgmr.msra.gmra.mrb[2].mxu1 %vm734_vm1, %v729_v47 }
 0x194   :  { %1405 = vmatprep.mubr.msk.f32.mxu1 %vm1676_vm0, %v1674_v0  ;;  %1404 = vmatpush3.msk.msra.mxu1 %vm814_vm2, %v809_v14 }
 0x195   :  { %1408 = vmatprep.subr.mxu1 %v1674_v0 }
 0x262   :  { %v1362_v15 = vpop.f32.mrb[0].mxu1 }
 0x263   :  { %v620_v16 = vpop.f32.mrb[1].mxu1 }
 0x266   :  { %v804_v17 = vpop.f32.mrb[2].mxu1 }
 0x267   :  { %v808_v18 = vmax.f32 %v804_v17, 0.0  ;;  %v1402_v19 = vpop.f32.mrb[3].mxu1 }
 0x269   :  { %1406 = vmatmul.mubr.msk.f32.vlgmr.msra.gmra.mrb[4].mxu1 %vm810_vm3, %v808_v18 }
 0x26a   :  { %1410 = vmatprep.mubr.msk.f32.mxu1 %vm1676_vm0, %v1674_v0  ;;  %1409 = vmatpush3.msra.mxu1 %v894_v20  ;;  %v1016_v0 = vld [vmem:[%s1989_s4] ss:$0 sm:$0xff] }
 0x26b   :  { %v639_v31 = vadd.f32 %v1362_v15, %v1016_v0  ;;  %v638_v32 = vadd.f32 %v1016_v0, %v620_v16 }
 0x33c   :  { %v884_v21 = vpop.f32.mrb[4].mxu1 }
 0x33d   :  { %v1020_v22 = vmul.f32 -1.442695, %v884_v21  ;;  %v1407_v23 = vpop.f32.mrb[5].mxu1 }
 0x33f   :  { %1643 = vpow2.f32 %v1020_v22 }
 0x349   :  { %v1644_v24 = vpop.eup %1643 }
 0x34a   :  { %v891_v25 = vadd.f32 1.0, %v1644_v24 }
 0x34c   :  { %1645 = vrcp.f32 %v891_v25 }
 0x356   :  { %v1646_v26 = vpop.eup %1645 }
 0x357   :  { %1411 = vmatmul.mubr.msk.f32.vlgmr.msra.gmra.mrb[6].mxu1 %vm734_vm1, %v1646_v26 }
 0x42a   :  { %v964_v30 = vpop.f32.mrb[6].mxu1 }
 0x42b   :  { %v971_v33 = vrot.slane %v964_v30, %v970_v29  ;;  %v1412_v34 = vpop.f32.mrb[7].mxu1 }
 0x42d   :  { %v972_v35 = vmul.f32 %v971_v33, %v638_v32  ;;  %v973_v36 = vmul.f32 %v971_v33, %v639_v31 }
 0x42f   :  { %v974_v37 = vadd.f32 %v972_v35, %v1762_v10  ;;  %v975_v38 = vadd.f32 %v973_v36, %v1775_v13 }
 0x431   :  { %976 = vst [vmem:[%s1994_s9] sm:$0xff] %v974_v37  ;;  %977 = vst [vmem:[%s1994_s9 + $0x8] sm:$0xff] %v975_v38 }
 0x432   :  { %982 = vsyncpa [#allocation4], 1 }

</bundles_post_ra>
